<compile_context>
chip_gen: v7x
topology: tpu7x:2x2x1
jax: 0.10.0
libtpu: 0.0.40
codegen_flags: <defaults>
</compile_context>

<pallas_src>
import math
import numpy as np
import jax
import jax.numpy as jnp
from jax import lax
from jax.experimental import pallas as pl
from jax.experimental.pallas import tpu as pltpu

# ----------------------------- configuration -------------------------------
B = 2              # batch
S = 8              # seq_len
DIM = 64           # model dim
N_Q = 4            # n_heads
N_KV = 2           # n_kv_heads
HD = DIM // N_Q    # head_dim = 16
H2 = HD // 2       # 8
N_REP = N_Q // N_KV
MULTIPLE_OF = 32
EPS = 1e-5
ROPE_THETA = 10000.0
START_POS = 0

_hff = int(2 * (4 * DIM) / 3)
HFF = MULTIPLE_OF * ((_hff + MULTIPLE_OF - 1) // MULTIPLE_OF)   # 192
HFF_PAD = 256      # pad each of gate/up to a 128-lane-aligned boundary

QW = N_Q * HD      # 64
KW = N_KV * HD     # 32
QKVW = QW + 2 * KW  # 128  -> one full lane tile for the fused QKV matmul


# ------------------------------- kernel -------------------------------------
def _rmsnorm(x, g):
    ms = jnp.mean(x * x, axis=-1, keepdims=True)
    return x * lax.rsqrt(ms + EPS) * g


# contract last dims of both operands (A @ B^T) without materializing a transpose
_DN_NT = (((1,), (1,)), ((), ()))


def encoder_block_kernel(x_ref, ga_ref, gf_ref, wqkv_ref, wo_ref, w13_ref,
                         w2_ref, cos_ref, sin_ref, o_ref, attn_sc):
    x = x_ref[0]                                            # (S, DIM) f32

    # ---------------- attention: norm -> fused QKV -> RoPE -> SDPA -> wo ----
    n = _rmsnorm(x, ga_ref[...])
    qkv = jnp.dot(n, wqkv_ref[...], preferred_element_type=jnp.float32)  # (S, 128)

    cos_q = cos_ref[...]                                    # (S, QW//2)
    sin_q = sin_ref[...]
    cos_k = cos_q[:, :KW // 2]                              # (S, KW//2) (same per head)
    sin_k = sin_q[:, :KW // 2]

    # rotate-half layout baked into the permuted wq/wk columns:
    #   qkv[:,  0:32]  = q even components (head-major)
    #   qkv[:, 32:64]  = q odd  components
    #   qkv[:, 64:80]  = k even, qkv[:, 80:96] = k odd
    #   qkv[:, 96:128] = v (original interleaved layout, no RoPE)
    qE = qkv[:, 0:QW // 2]
    qO = qkv[:, QW // 2:QW]
    kE = qkv[:, QW:QW + KW // 2]
    kO = qkv[:, QW + KW // 2:QW + KW]
    v = qkv[:, QW + KW:QKVW]

    q_re = qE * cos_q - qO * sin_q                          # rotated even comps
    q_ro = qO * cos_q + qE * sin_q                          # rotated odd comps
    k_re = kE * cos_k - kO * sin_k
    k_ro = kO * cos_k + kE * sin_k

    scale = 1.0 / math.sqrt(HD)
    for h in range(N_Q):                                    # static, unrolled
        g = h // N_REP                                      # GQA group (repeat_kv)
        s = (lax.dot_general(q_re[:, h * H2:(h + 1) * H2],
                             k_re[:, g * H2:(g + 1) * H2],
                             _DN_NT, preferred_element_type=jnp.float32)
             + lax.dot_general(q_ro[:, h * H2:(h + 1) * H2],
                               k_ro[:, g * H2:(g + 1) * H2],
                               _DN_NT, preferred_element_type=jnp.float32)) * scale
        m = jnp.max(s, axis=-1, keepdims=True)
        e = jnp.exp(s - m)
        p = e / jnp.sum(e, axis=-1, keepdims=True)          # no causal mask (as ref)
        attn_sc[:, h * HD:(h + 1) * HD] = jnp.dot(
            p, v[:, g * HD:(g + 1) * HD], preferred_element_type=jnp.float32)

    attn_out = jnp.dot(attn_sc[...], wo_ref[...], preferred_element_type=jnp.float32)
    h_res = x + attn_out                                    # residual 1

    # ---------------- FFN: norm -> fused gate/up -> SiLU gate -> down -------
    n2 = _rmsnorm(h_res, gf_ref[...])
    u = jnp.dot(n2, w13_ref[...], preferred_element_type=jnp.float32)  # (S, 512)
    a = u[:, :HFF_PAD]                                      # gate (padded, pad==0)
    b = u[:, HFF_PAD:]                                      # up   (padded, pad==0)
    gated = a * jax.nn.sigmoid(a) * b                       # SiLU(gate) * up
    ff = jnp.dot(gated, w2_ref[...], preferred_element_type=jnp.float32)
    o_ref[0] = h_res + ff                                   # residual 2


# ------------------------------- wrapper -------------------------------------
def _rope_col_perm(n_heads, head_dim):
    """New column order = [all even comps (head-major), all odd comps]."""
    e = np.concatenate([np.arange(h * head_dim, (h + 1) * head_dim, 2)
                        for h in range(n_heads)])
    return np.concatenate([e, e + 1])


def _prep_inputs(params, rope_cos, rope_sin):
    perm_q = _rope_col_perm(N_Q, HD)
    perm_k = _rope_col_perm(N_KV, HD)
    wqT = params["wq"].T[:, perm_q]                         # (DIM, QW) rotate-half layout
    wkT = params["wk"].T[:, perm_k]                         # (DIM, KW)
    wvT = params["wv"].T                                    # (DIM, KW) original layout
    wqkv = jnp.concatenate([wqT, wkT, wvT], axis=1)         # (DIM, 128)

    woT = params["wo"].T                                    # (QW, DIM)

    zc = jnp.zeros((DIM, HFF_PAD - HFF), jnp.float32)
    w13 = jnp.concatenate([params["w1"].T, zc, params["w3"].T, zc], axis=1)  # (DIM, 512)
    w2p = jnp.concatenate(
        [params["w2"].T, jnp.zeros((HFF_PAD - HFF, DIM), jnp.float32)], axis=0)  # (256, DIM)

    g_attn = params["g_attn"][None, :]
    g_ffn = params["g_ffn"][None, :]

    cos_q = jnp.asarray(np.tile(rope_cos, (1, N_Q)))        # (S, QW//2)
    sin_q = jnp.asarray(np.tile(rope_sin, (1, N_Q)))
    return g_attn, g_ffn, wqkv, woT, w13, w2p, cos_q, sin_q


def encoder_block_pallas(x, params, rope_cos, rope_sin):
    Bx, Sx, Dx = x.shape
    ga, gf, wqkv, woT, w13, w2p, cos_q, sin_q = _prep_inputs(params, rope_cos, rope_sin)

    act_spec = pl.BlockSpec((1, Sx, Dx), lambda b: (b, 0, 0))

    def full(shape):
        return pl.BlockSpec(shape, lambda b: (0, 0))

    return pl.pallas_call(
        encoder_block_kernel,
        out_shape=jax.ShapeDtypeStruct((Bx, Sx, Dx), jnp.float32),
        grid=(Bx,),
        in_specs=[
            act_spec,                      # x
            full((1, Dx)),                 # attention_norm weight
            full((1, Dx)),                 # ffn_norm weight
            full((Dx, QKVW)),              # fused [wq|wk|wv]
            full((QW, Dx)),                # wo
            full((Dx, 2 * HFF_PAD)),       # fused [w1|pad|w3|pad]
            full((HFF_PAD, Dx)),           # w2 (rows zero-padded)
            full((Sx, QW // 2)),           # cos table
            full((Sx, QW // 2)),           # sin table
        ],
        out_specs=act_spec,
        scratch_shapes=[pltpu.VMEM((Sx, QW), jnp.float32)],  # per-head output slab
        compiler_params=pltpu.CompilerParams(
            dimension_semantics=("parallel",)),   # 2 batch elems -> 2 TCs on v7x
    )(x, ga, gf, wqkv, woT, w13, w2p, cos_q, sin_q)


# -------------------------- params / rope tables ----------------------------
def make_params(key):
    ks = jax.random.split(key, 7)

    def lin(k, out_f, in_f):
        return (jax.random.normal(k, (out_f, in_f), jnp.float32)
                / np.sqrt(in_f)).astype(jnp.float32)

    return {
        "wq": lin(ks[0], QW, DIM),
        "wk": lin(ks[1], KW, DIM),
        "wv": lin(ks[2], KW, DIM),
        "wo": lin(ks[3], DIM, QW),
        "w1": lin(ks[4], HFF, DIM),   # gate proj (dim -> hidden)
        "w3": lin(ks[5], HFF, DIM),   # up proj   (dim -> hidden)
        "w2": lin(ks[6], DIM, HFF),   # down proj (hidden -> dim)
        "g_attn": jnp.ones((DIM,), jnp.float32),
        "g_ffn": jnp.ones((DIM,), jnp.float32),
    }


def make_rope_freqs(seq_len, start_pos):
    inv = 1.0 / (ROPE_THETA ** (np.arange(0, HD, 2, dtype=np.float32) / HD))  # (HD/2,)
    t = np.arange(start_pos, start_pos + seq_len, dtype=np.float32)
    ang = np.outer(t, inv)                                   # (S, HD/2)
    return np.cos(ang).astype(np.float32), np.sin(ang).astype(np.float32)


# ------------------------- numpy reference (checking) -----------------------
def _np_rms(x, g):
    ms = (x * x).mean(-1, keepdims=True)
    return x / np.sqrt(ms + EPS) * g


def _np_rope(x, cos, sin):  # x: (B,S,H,HD), cos/sin: (S, HD/2)
    b, s, h, d = x.shape
    xr = x.reshape(b, s, h, d // 2, 2)
    xe, xo = xr[..., 0], xr[..., 1]
    c = cos[None, :, None, :]
    sn = sin[None, :, None, :]
    oe = xe * c - xo * sn
    oo = xe * sn + xo * c
    return np.stack([oe, oo], axis=-1).reshape(b, s, h, d)


def ref_encoder_block(x, p, cos, sin):
    n = _np_rms(x, p["g_attn"])
    q = n @ p["wq"].T
    k = n @ p["wk"].T
    v = n @ p["wv"].T
    b, s, _ = x.shape
    q = q.reshape(b, s, N_Q, HD)
    k = k.reshape(b, s, N_KV, HD)
    v = v.reshape(b, s, N_KV, HD)
    q = _np_rope(q, cos, sin)
    k = _np_rope(k, cos, sin)
    k = np.repeat(k, N_REP, axis=2)
    v = np.repeat(v, N_REP, axis=2)
    qt = q.transpose(0, 2, 1, 3)
    kt = k.transpose(0, 2, 1, 3)
    vt = v.transpose(0, 2, 1, 3)
    sc = qt @ kt.transpose(0, 1, 3, 2) / math.sqrt(HD)
    sc = sc - sc.max(-1, keepdims=True)
    e = np.exp(sc)
    att = e / e.sum(-1, keepdims=True)
    o = (att @ vt).transpose(0, 2, 1, 3).reshape(b, s, -1)
    h = x + o @ p["wo"].T

    n2 = _np_rms(h, p["g_ffn"])
    a = n2 @ p["w1"].T
    up = n2 @ p["w3"].T
    swish = a * (1.0 / (1.0 + np.exp(-a)))
    ff = (swish * up) @ p["w2"].T
    return h + ff


# --------------------------------- main --------------------------------------
if __name__ == "__main__":
    key = jax.random.PRNGKey(0)
    k_x, k_p = jax.random.split(key)
    x = jax.random.normal(k_x, (B, S, DIM), jnp.float32)
    params = make_params(k_p)
    cos_np, sin_np = make_rope_freqs(S, START_POS)

    out = encoder_block_pallas(x, params, cos_np, sin_np)
    out = jax.block_until_ready(out)

    # cross-check vs. pure-numpy reference of the same math.
    # tolerance tightened vs. previous 1e-2; left at 2e-3 to allow for MXU
    # f32 rounding while still catching layout / semantics mistakes.
    p_np = {k: np.asarray(v) for k, v in params.items()}
    ref = ref_encoder_block(np.asarray(x), p_np, cos_np, sin_np)
    np.testing.assert_allclose(np.asarray(out), ref, rtol=2e-3, atol=2e-3)

    print("KERNEL_OK")
</pallas_src>

<mosaic_0001>
module attributes {stable_mosaic.version = 11 : i64} {
  func.func @encoder_block_kernel(%arg0: i32, %arg1: memref<1x8x64xf32, #tpu.memory_space<vmem>>, %arg2: memref<1x64xf32, #tpu.memory_space<vmem>>, %arg3: memref<1x64xf32, #tpu.memory_space<vmem>>, %arg4: memref<64x128xf32, #tpu.memory_space<vmem>>, %arg5: memref<64x64xf32, #tpu.memory_space<vmem>>, %arg6: memref<64x512xf32, #tpu.memory_space<vmem>>, %arg7: memref<256x64xf32, #tpu.memory_space<vmem>>, %arg8: memref<8x32xf32, #tpu.memory_space<vmem>>, %arg9: memref<8x32xf32, #tpu.memory_space<vmem>>, %arg10: memref<1x8x64xf32, #tpu.memory_space<vmem>>, %arg11: memref<8x64xf32, #tpu.memory_space<vmem>>) attributes {dimension_semantics = [#tpu.dimension_semantics<parallel>], iteration_bounds = array<i64: 2>, scalar_prefetch = 0 : i64, scratch_operands = 1 : i64, tpu.core_type = #tpu.core_type<tc>, window_params = [{transform_indices = @transform_0, window_bounds = array<i64: 1, 8, 64>}, {pipeline_mode = #tpu.pipeline_mode<synchronous>, transform_indices = @transform_1, window_bounds = array<i64: 1, 64>}, {pipeline_mode = #tpu.pipeline_mode<synchronous>, transform_indices = @transform_2, window_bounds = array<i64: 1, 64>}, {pipeline_mode = #tpu.pipeline_mode<synchronous>, transform_indices = @transform_3, window_bounds = array<i64: 64, 128>}, {pipeline_mode = #tpu.pipeline_mode<synchronous>, transform_indices = @transform_4, window_bounds = array<i64: 64, 64>}, {pipeline_mode = #tpu.pipeline_mode<synchronous>, transform_indices = @transform_5, window_bounds = array<i64: 64, 512>}, {pipeline_mode = #tpu.pipeline_mode<synchronous>, transform_indices = @transform_6, window_bounds = array<i64: 256, 64>}, {pipeline_mode = #tpu.pipeline_mode<synchronous>, transform_indices = @transform_7, window_bounds = array<i64: 8, 32>}, {pipeline_mode = #tpu.pipeline_mode<synchronous>, transform_indices = @transform_8, window_bounds = array<i64: 8, 32>}, {transform_indices = @transform_9, window_bounds = array<i64: 1, 8, 64>}]} {
    %c0 = arith.constant 0 : index
    %c0_0 = arith.constant 0 : index
    %c0_1 = arith.constant 0 : index
    %0 = vector.load %arg1[%c0, %c0_0, %c0_1] : memref<1x8x64xf32, #tpu.memory_space<vmem>>, vector<1x8x64xf32>
    %1 = vector.shape_cast %0 : vector<1x8x64xf32> to vector<8x64xf32>
    %c0_2 = arith.constant 0 : index
    %c0_3 = arith.constant 0 : index
    %2 = vector.load %arg2[%c0_2, %c0_3] : memref<1x64xf32, #tpu.memory_space<vmem>>, vector<1x64xf32>
    %3 = arith.mulf %1, %1 : vector<8x64xf32>
    %cst = arith.constant dense<0.000000e+00> : vector<8xf32>
    %4 = vector.multi_reduction <add>, %3, %cst [1] : vector<8x64xf32> to vector<8xf32>
    %5 = vector.shape_cast %4 : vector<8xf32> to vector<8x1xf32>
    %cst_4 = arith.constant 6.400000e+01 : f32
    %6 = vector.broadcast %cst_4 : f32 to vector<8x1xf32>
    %7 = arith.divf %5, %6 : vector<8x1xf32>
    %cst_5 = arith.constant 9.99999974E-6 : f32
    %8 = vector.broadcast %cst_5 : f32 to vector<8x1xf32>
    %9 = arith.addf %7, %8 : vector<8x1xf32>
    %10 = math.rsqrt %9 : vector<8x1xf32>
    %11 = vector.broadcast %10 : vector<8x1xf32> to vector<8x64xf32>
    %12 = arith.mulf %1, %11 : vector<8x64xf32>
    %13 = vector.broadcast %2 : vector<1x64xf32> to vector<8x64xf32>
    %14 = arith.mulf %12, %13 : vector<8x64xf32>
    %c0_6 = arith.constant 0 : index
    %c0_7 = arith.constant 0 : index
    %15 = vector.load %arg4[%c0_6, %c0_7] : memref<64x128xf32, #tpu.memory_space<vmem>>, vector<64x128xf32>
    %cst_8 = arith.constant dense<0.000000e+00> : vector<8x128xf32>
    %16 = tpu.matmul %14, %15, %cst_8 {dimension_numbers = #tpu.dot_dimension_numbers<[1], [0], [0], [1], [0, 0, 1, 1], [], []>} : vector<8x64xf32>, vector<64x128xf32>, vector<8x128xf32> -> vector<8x128xf32>
    %c0_9 = arith.constant 0 : index
    %c0_10 = arith.constant 0 : index
    %17 = vector.load %arg8[%c0_9, %c0_10] : memref<8x32xf32, #tpu.memory_space<vmem>>, vector<8x32xf32>
    %c0_11 = arith.constant 0 : index
    %c0_12 = arith.constant 0 : index
    %18 = vector.load %arg9[%c0_11, %c0_12] : memref<8x32xf32, #tpu.memory_space<vmem>>, vector<8x32xf32>
    %19 = vector.extract_strided_slice %17 {offsets = [0, 0], sizes = [8, 16], strides = [1, 1]} : vector<8x32xf32> to vector<8x16xf32>
    %20 = vector.extract_strided_slice %18 {offsets = [0, 0], sizes = [8, 16], strides = [1, 1]} : vector<8x32xf32> to vector<8x16xf32>
    %21 = vector.extract_strided_slice %16 {offsets = [0, 0], sizes = [8, 32], strides = [1, 1]} : vector<8x128xf32> to vector<8x32xf32>
    %22 = vector.extract_strided_slice %16 {offsets = [0, 32], sizes = [8, 32], strides = [1, 1]} : vector<8x128xf32> to vector<8x32xf32>
    %23 = vector.extract_strided_slice %16 {offsets = [0, 64], sizes = [8, 16], strides = [1, 1]} : vector<8x128xf32> to vector<8x16xf32>
    %24 = vector.extract_strided_slice %16 {offsets = [0, 80], sizes = [8, 16], strides = [1, 1]} : vector<8x128xf32> to vector<8x16xf32>
    %25 = vector.extract_strided_slice %16 {offsets = [0, 96], sizes = [8, 32], strides = [1, 1]} : vector<8x128xf32> to vector<8x32xf32>
    %26 = arith.mulf %21, %17 : vector<8x32xf32>
    %27 = arith.mulf %22, %18 : vector<8x32xf32>
    %28 = arith.subf %26, %27 : vector<8x32xf32>
    %29 = arith.mulf %22, %17 : vector<8x32xf32>
    %30 = arith.mulf %21, %18 : vector<8x32xf32>
    %31 = arith.addf %29, %30 : vector<8x32xf32>
    %32 = arith.mulf %23, %19 : vector<8x16xf32>
    %33 = arith.mulf %24, %20 : vector<8x16xf32>
    %34 = arith.subf %32, %33 : vector<8x16xf32>
    %35 = arith.mulf %24, %19 : vector<8x16xf32>
    %36 = arith.mulf %23, %20 : vector<8x16xf32>
    %37 = arith.addf %35, %36 : vector<8x16xf32>
    %38 = vector.extract_strided_slice %28 {offsets = [0, 0], sizes = [8, 8], strides = [1, 1]} : vector<8x32xf32> to vector<8x8xf32>
    %39 = vector.extract_strided_slice %34 {offsets = [0, 0], sizes = [8, 8], strides = [1, 1]} : vector<8x16xf32> to vector<8x8xf32>
    %cst_13 = arith.constant dense<0.000000e+00> : vector<8x8xf32>
    %40 = tpu.matmul %38, %39, %cst_13 {dimension_numbers = #tpu.dot_dimension_numbers<[1], [1], [0], [0], [0, 0, 1, 0], [], []>} : vector<8x8xf32>, vector<8x8xf32>, vector<8x8xf32> -> vector<8x8xf32>
    %41 = vector.extract_strided_slice %31 {offsets = [0, 0], sizes = [8, 8], strides = [1, 1]} : vector<8x32xf32> to vector<8x8xf32>
    %42 = vector.extract_strided_slice %37 {offsets = [0, 0], sizes = [8, 8], strides = [1, 1]} : vector<8x16xf32> to vector<8x8xf32>
    %cst_14 = arith.constant dense<0.000000e+00> : vector<8x8xf32>
    %43 = tpu.matmul %41, %42, %cst_14 {dimension_numbers = #tpu.dot_dimension_numbers<[1], [1], [0], [0], [0, 0, 1, 0], [], []>} : vector<8x8xf32>, vector<8x8xf32>, vector<8x8xf32> -> vector<8x8xf32>
    %44 = arith.addf %40, %43 : vector<8x8xf32>
    %cst_15 = arith.constant 2.500000e-01 : f32
    %45 = vector.broadcast %cst_15 : f32 to vector<8x8xf32>
    %46 = arith.mulf %44, %45 : vector<8x8xf32>
    %cst_16 = arith.constant dense<0xFF800000> : vector<8xf32>
    %47 = vector.multi_reduction <maximumf>, %46, %cst_16 [1] : vector<8x8xf32> to vector<8xf32>
    %48 = vector.shape_cast %47 : vector<8xf32> to vector<8x1xf32>
    %49 = vector.broadcast %48 : vector<8x1xf32> to vector<8x8xf32>
    %50 = arith.subf %46, %49 : vector<8x8xf32>
    %51 = math.exp %50 : vector<8x8xf32>
    %cst_17 = arith.constant dense<0.000000e+00> : vector<8xf32>
    %52 = vector.multi_reduction <add>, %51, %cst_17 [1] : vector<8x8xf32> to vector<8xf32>
    %53 = vector.shape_cast %52 : vector<8xf32> to vector<8x1xf32>
    %54 = vector.broadcast %53 : vector<8x1xf32> to vector<8x8xf32>
    %55 = arith.divf %51, %54 : vector<8x8xf32>
    %56 = vector.extract_strided_slice %25 {offsets = [0, 0], sizes = [8, 16], strides = [1, 1]} : vector<8x32xf32> to vector<8x16xf32>
    %cst_18 = arith.constant dense<0.000000e+00> : vector<8x16xf32>
    %57 = tpu.matmul %55, %56, %cst_18 {dimension_numbers = #tpu.dot_dimension_numbers<[1], [0], [0], [1], [0, 0, 1, 1], [], []>} : vector<8x8xf32>, vector<8x16xf32>, vector<8x16xf32> -> vector<8x16xf32>
    %c0_19 = arith.constant 0 : index
    %c0_20 = arith.constant 0 : index
    %58 = vector.load %arg11[%c0_19, %c0_20] : memref<8x64xf32, #tpu.memory_space<vmem>>, vector<8x16xf32>
    tpu.vector_store %arg11[%c0_19, %c0_20], %57 {strides = array<i32>} : memref<8x64xf32, #tpu.memory_space<vmem>>, vector<8x16xf32>,
    %59 = vector.extract_strided_slice %28 {offsets = [0, 8], sizes = [8, 8], strides = [1, 1]} : vector<8x32xf32> to vector<8x8xf32>
    %60 = vector.extract_strided_slice %34 {offsets = [0, 0], sizes = [8, 8], strides = [1, 1]} : vector<8x16xf32> to vector<8x8xf32>
    %cst_21 = arith.constant dense<0.000000e+00> : vector<8x8xf32>
    %61 = tpu.matmul %59, %60, %cst_21 {dimension_numbers = #tpu.dot_dimension_numbers<[1], [1], [0], [0], [0, 0, 1, 0], [], []>} : vector<8x8xf32>, vector<8x8xf32>, vector<8x8xf32> -> vector<8x8xf32>
    %62 = vector.extract_strided_slice %31 {offsets = [0, 8], sizes = [8, 8], strides = [1, 1]} : vector<8x32xf32> to vector<8x8xf32>
    %63 = vector.extract_strided_slice %37 {offsets = [0, 0], sizes = [8, 8], strides = [1, 1]} : vector<8x16xf32> to vector<8x8xf32>
    %cst_22 = arith.constant dense<0.000000e+00> : vector<8x8xf32>
    %64 = tpu.matmul %62, %63, %cst_22 {dimension_numbers = #tpu.dot_dimension_numbers<[1], [1], [0], [0], [0, 0, 1, 0], [], []>} : vector<8x8xf32>, vector<8x8xf32>, vector<8x8xf32> -> vector<8x8xf32>
    %65 = arith.addf %61, %64 : vector<8x8xf32>
    %cst_23 = arith.constant 2.500000e-01 : f32
    %66 = vector.broadcast %cst_23 : f32 to vector<8x8xf32>
    %67 = arith.mulf %65, %66 : vector<8x8xf32>
    %cst_24 = arith.constant dense<0xFF800000> : vector<8xf32>
    %68 = vector.multi_reduction <maximumf>, %67, %cst_24 [1] : vector<8x8xf32> to vector<8xf32>
    %69 = vector.shape_cast %68 : vector<8xf32> to vector<8x1xf32>
    %70 = vector.broadcast %69 : vector<8x1xf32> to vector<8x8xf32>
    %71 = arith.subf %67, %70 : vector<8x8xf32>
    %72 = math.exp %71 : vector<8x8xf32>
    %cst_25 = arith.constant dense<0.000000e+00> : vector<8xf32>
    %73 = vector.multi_reduction <add>, %72, %cst_25 [1] : vector<8x8xf32> to vector<8xf32>
    %74 = vector.shape_cast %73 : vector<8xf32> to vector<8x1xf32>
    %75 = vector.broadcast %74 : vector<8x1xf32> to vector<8x8xf32>
    %76 = arith.divf %72, %75 : vector<8x8xf32>
    %77 = vector.extract_strided_slice %25 {offsets = [0, 0], sizes = [8, 16], strides = [1, 1]} : vector<8x32xf32> to vector<8x16xf32>
    %cst_26 = arith.constant dense<0.000000e+00> : vector<8x16xf32>
    %78 = tpu.matmul %76, %77, %cst_26 {dimension_numbers = #tpu.dot_dimension_numbers<[1], [0], [0], [1], [0, 0, 1, 1], [], []>} : vector<8x8xf32>, vector<8x16xf32>, vector<8x16xf32> -> vector<8x16xf32>
    %c0_27 = arith.constant 0 : index
    %c16 = arith.constant 16 : index
    %79 = vector.load %arg11[%c0_27, %c16] : memref<8x64xf32, #tpu.memory_space<vmem>>, vector<8x16xf32>
    tpu.vector_store %arg11[%c0_27, %c16], %78 {strides = array<i32>} : memref<8x64xf32, #tpu.memory_space<vmem>>, vector<8x16xf32>,
    %80 = vector.extract_strided_slice %28 {offsets = [0, 16], sizes = [8, 8], strides = [1, 1]} : vector<8x32xf32> to vector<8x8xf32>
    %81 = vector.extract_strided_slice %34 {offsets = [0, 8], sizes = [8, 8], strides = [1, 1]} : vector<8x16xf32> to vector<8x8xf32>
    %cst_28 = arith.constant dense<0.000000e+00> : vector<8x8xf32>
    %82 = tpu.matmul %80, %81, %cst_28 {dimension_numbers = #tpu.dot_dimension_numbers<[1], [1], [0], [0], [0, 0, 1, 0], [], []>} : vector<8x8xf32>, vector<8x8xf32>, vector<8x8xf32> -> vector<8x8xf32>
    %83 = vector.extract_strided_slice %31 {offsets = [0, 16], sizes = [8, 8], strides = [1, 1]} : vector<8x32xf32> to vector<8x8xf32>
    %84 = vector.extract_strided_slice %37 {offsets = [0, 8], sizes = [8, 8], strides = [1, 1]} : vector<8x16xf32> to vector<8x8xf32>
    %cst_29 = arith.constant dense<0.000000e+00> : vector<8x8xf32>
    %85 = tpu.matmul %83, %84, %cst_29 {dimension_numbers = #tpu.dot_dimension_numbers<[1], [1], [0], [0], [0, 0, 1, 0], [], []>} : vector<8x8xf32>, vector<8x8xf32>, vector<8x8xf32> -> vector<8x8xf32>
    %86 = arith.addf %82, %85 : vector<8x8xf32>
    %cst_30 = arith.constant 2.500000e-01 : f32
    %87 = vector.broadcast %cst_30 : f32 to vector<8x8xf32>
    %88 = arith.mulf %86, %87 : vector<8x8xf32>
    %cst_31 = arith.constant dense<0xFF800000> : vector<8xf32>
    %89 = vector.multi_reduction <maximumf>, %88, %cst_31 [1] : vector<8x8xf32> to vector<8xf32>
    %90 = vector.shape_cast %89 : vector<8xf32> to vector<8x1xf32>
    %91 = vector.broadcast %90 : vector<8x1xf32> to vector<8x8xf32>
    %92 = arith.subf %88, %91 : vector<8x8xf32>
    %93 = math.exp %92 : vector<8x8xf32>
    %cst_32 = arith.constant dense<0.000000e+00> : vector<8xf32>
    %94 = vector.multi_reduction <add>, %93, %cst_32 [1] : vector<8x8xf32> to vector<8xf32>
    %95 = vector.shape_cast %94 : vector<8xf32> to vector<8x1xf32>
    %96 = vector.broadcast %95 : vector<8x1xf32> to vector<8x8xf32>
    %97 = arith.divf %93, %96 : vector<8x8xf32>
    %98 = vector.extract_strided_slice %25 {offsets = [0, 16], sizes = [8, 16], strides = [1, 1]} : vector<8x32xf32> to vector<8x16xf32>
    %cst_33 = arith.constant dense<0.000000e+00> : vector<8x16xf32>
    %99 = tpu.matmul %97, %98, %cst_33 {dimension_numbers = #tpu.dot_dimension_numbers<[1], [0], [0], [1], [0, 0, 1, 1], [], []>} : vector<8x8xf32>, vector<8x16xf32>, vector<8x16xf32> -> vector<8x16xf32>
    %c0_34 = arith.constant 0 : index
    %c32 = arith.constant 32 : index
    %100 = vector.load %arg11[%c0_34, %c32] : memref<8x64xf32, #tpu.memory_space<vmem>>, vector<8x16xf32>
    tpu.vector_store %arg11[%c0_34, %c32], %99 {strides = array<i32>} : memref<8x64xf32, #tpu.memory_space<vmem>>, vector<8x16xf32>,
    %101 = vector.extract_strided_slice %28 {offsets = [0, 24], sizes = [8, 8], strides = [1, 1]} : vector<8x32xf32> to vector<8x8xf32>
    %102 = vector.extract_strided_slice %34 {offsets = [0, 8], sizes = [8, 8], strides = [1, 1]} : vector<8x16xf32> to vector<8x8xf32>
    %cst_35 = arith.constant dense<0.000000e+00> : vector<8x8xf32>
    %103 = tpu.matmul %101, %102, %cst_35 {dimension_numbers = #tpu.dot_dimension_numbers<[1], [1], [0], [0], [0, 0, 1, 0], [], []>} : vector<8x8xf32>, vector<8x8xf32>, vector<8x8xf32> -> vector<8x8xf32>
    %104 = vector.extract_strided_slice %31 {offsets = [0, 24], sizes = [8, 8], strides = [1, 1]} : vector<8x32xf32> to vector<8x8xf32>
    %105 = vector.extract_strided_slice %37 {offsets = [0, 8], sizes = [8, 8], strides = [1, 1]} : vector<8x16xf32> to vector<8x8xf32>
    %cst_36 = arith.constant dense<0.000000e+00> : vector<8x8xf32>
    %106 = tpu.matmul %104, %105, %cst_36 {dimension_numbers = #tpu.dot_dimension_numbers<[1], [1], [0], [0], [0, 0, 1, 0], [], []>} : vector<8x8xf32>, vector<8x8xf32>, vector<8x8xf32> -> vector<8x8xf32>
    %107 = arith.addf %103, %106 : vector<8x8xf32>
    %cst_37 = arith.constant 2.500000e-01 : f32
    %108 = vector.broadcast %cst_37 : f32 to vector<8x8xf32>
    %109 = arith.mulf %107, %108 : vector<8x8xf32>
    %cst_38 = arith.constant dense<0xFF800000> : vector<8xf32>
    %110 = vector.multi_reduction <maximumf>, %109, %cst_38 [1] : vector<8x8xf32> to vector<8xf32>
    %111 = vector.shape_cast %110 : vector<8xf32> to vector<8x1xf32>
    %112 = vector.broadcast %111 : vector<8x1xf32> to vector<8x8xf32>
    %113 = arith.subf %109, %112 : vector<8x8xf32>
    %114 = math.exp %113 : vector<8x8xf32>
    %cst_39 = arith.constant dense<0.000000e+00> : vector<8xf32>
    %115 = vector.multi_reduction <add>, %114, %cst_39 [1] : vector<8x8xf32> to vector<8xf32>
    %116 = vector.shape_cast %115 : vector<8xf32> to vector<8x1xf32>
    %117 = vector.broadcast %116 : vector<8x1xf32> to vector<8x8xf32>
    %118 = arith.divf %114, %117 : vector<8x8xf32>
    %119 = vector.extract_strided_slice %25 {offsets = [0, 16], sizes = [8, 16], strides = [1, 1]} : vector<8x32xf32> to vector<8x16xf32>
    %cst_40 = arith.constant dense<0.000000e+00> : vector<8x16xf32>
    %120 = tpu.matmul %118, %119, %cst_40 {dimension_numbers = #tpu.dot_dimension_numbers<[1], [0], [0], [1], [0, 0, 1, 1], [], []>} : vector<8x8xf32>, vector<8x16xf32>, vector<8x16xf32> -> vector<8x16xf32>
    %c0_41 = arith.constant 0 : index
    %c48 = arith.constant 48 : index
    %121 = vector.load %arg11[%c0_41, %c48] : memref<8x64xf32, #tpu.memory_space<vmem>>, vector<8x16xf32>
    tpu.vector_store %arg11[%c0_41, %c48], %120 {strides = array<i32>} : memref<8x64xf32, #tpu.memory_space<vmem>>, vector<8x16xf32>,
    %c0_42 = arith.constant 0 : index
    %c0_43 = arith.constant 0 : index
    %122 = vector.load %arg11[%c0_42, %c0_43] : memref<8x64xf32, #tpu.memory_space<vmem>>, vector<8x64xf32>
    %c0_44 = arith.constant 0 : index
    %c0_45 = arith.constant 0 : index
    %123 = vector.load %arg5[%c0_44, %c0_45] : memref<64x64xf32, #tpu.memory_space<vmem>>, vector<64x64xf32>
    %cst_46 = arith.constant dense<0.000000e+00> : vector<8x64xf32>
    %124 = tpu.matmul %122, %123, %cst_46 {dimension_numbers = #tpu.dot_dimension_numbers<[1], [0], [0], [1], [0, 0, 1, 1], [], []>} : vector<8x64xf32>, vector<64x64xf32>, vector<8x64xf32> -> vector<8x64xf32>
    %125 = arith.addf %1, %124 : vector<8x64xf32>
    %c0_47 = arith.constant 0 : index
    %c0_48 = arith.constant 0 : index
    %126 = vector.load %arg3[%c0_47, %c0_48] : memref<1x64xf32, #tpu.memory_space<vmem>>, vector<1x64xf32>
    %127 = arith.mulf %125, %125 : vector<8x64xf32>
    %cst_49 = arith.constant dense<0.000000e+00> : vector<8xf32>
    %128 = vector.multi_reduction <add>, %127, %cst_49 [1] : vector<8x64xf32> to vector<8xf32>
    %129 = vector.shape_cast %128 : vector<8xf32> to vector<8x1xf32>
    %cst_50 = arith.constant 6.400000e+01 : f32
    %130 = vector.broadcast %cst_50 : f32 to vector<8x1xf32>
    %131 = arith.divf %129, %130 : vector<8x1xf32>
    %cst_51 = arith.constant 9.99999974E-6 : f32
    %132 = vector.broadcast %cst_51 : f32 to vector<8x1xf32>
    %133 = arith.addf %131, %132 : vector<8x1xf32>
    %134 = math.rsqrt %133 : vector<8x1xf32>
    %135 = vector.broadcast %134 : vector<8x1xf32> to vector<8x64xf32>
    %136 = arith.mulf %125, %135 : vector<8x64xf32>
    %137 = vector.broadcast %126 : vector<1x64xf32> to vector<8x64xf32>
    %138 = arith.mulf %136, %137 : vector<8x64xf32>
    %c0_52 = arith.constant 0 : index
    %c0_53 = arith.constant 0 : index
    %139 = vector.load %arg6[%c0_52, %c0_53] : memref<64x512xf32, #tpu.memory_space<vmem>>, vector<64x512xf32>
    %cst_54 = arith.constant dense<0.000000e+00> : vector<8x512xf32>
    %140 = tpu.matmul %138, %139, %cst_54 {dimension_numbers = #tpu.dot_dimension_numbers<[1], [0], [0], [1], [0, 0, 1, 1], [], []>} : vector<8x64xf32>, vector<64x512xf32>, vector<8x512xf32> -> vector<8x512xf32>
    %141 = vector.extract_strided_slice %140 {offsets = [0, 0], sizes = [8, 256], strides = [1, 1]} : vector<8x512xf32> to vector<8x256xf32>
    %142 = vector.extract_strided_slice %140 {offsets = [0, 256], sizes = [8, 256], strides = [1, 1]} : vector<8x512xf32> to vector<8x256xf32>
    %143 = arith.negf %141 : vector<8x256xf32>
    %144 = math.exp %143 : vector<8x256xf32>
    %cst_55 = arith.constant 1.000000e+00 : f32
    %145 = vector.broadcast %cst_55 : f32 to vector<8x256xf32>
    %146 = arith.addf %145, %144 : vector<8x256xf32>
    %147 = arith.divf %145, %146 : vector<8x256xf32>
    %148 = arith.mulf %141, %147 : vector<8x256xf32>
    %149 = arith.mulf %148, %142 : vector<8x256xf32>
    %c0_56 = arith.constant 0 : index
    %c0_57 = arith.constant 0 : index
    %150 = vector.load %arg7[%c0_56, %c0_57] : memref<256x64xf32, #tpu.memory_space<vmem>>, vector<256x64xf32>
    %cst_58 = arith.constant dense<0.000000e+00> : vector<8x64xf32>
    %151 = tpu.matmul %149, %150, %cst_58 {dimension_numbers = #tpu.dot_dimension_numbers<[1], [0], [0], [1], [0, 0, 1, 1], [], []>} : vector<8x256xf32>, vector<256x64xf32>, vector<8x64xf32> -> vector<8x64xf32>
    %152 = arith.addf %125, %151 : vector<8x64xf32>
    %c0_59 = arith.constant 0 : index
    %c0_60 = arith.constant 0 : index
    %c0_61 = arith.constant 0 : index
    %153 = vector.load %arg10[%c0_59, %c0_60, %c0_61] : memref<1x8x64xf32, #tpu.memory_space<vmem>>, vector<1x8x64xf32>
    %154 = vector.shape_cast %153 : vector<1x8x64xf32> to vector<8x64xf32>
    %155 = vector.shape_cast %152 : vector<8x64xf32> to vector<1x8x64xf32>
    tpu.vector_store %arg10[%c0_59, %c0_60, %c0_61], %155 {strides = array<i32>} : memref<1x8x64xf32, #tpu.memory_space<vmem>>, vector<1x8x64xf32>,
    return
  }
  func.func @transform_0(%arg0: i32) -> (i32, i32, i32) {
    %c0_i32 = arith.constant 0 : i32
    %c0_i32_0 = arith.constant 0 : i32
    %c0_i32_1 = arith.constant 0 : i32
    return %arg0, %c0_i32, %c0_i32_0 : i32, i32, i32
  }
  func.func @transform_1(%arg0: i32) -> (i32, i32) {
    %c0_i32 = arith.constant 0 : i32
    %c0_i32_0 = arith.constant 0 : i32
    %c0_i32_1 = arith.constant 0 : i32
    return %c0_i32, %c0_i32_0 : i32, i32
  }
  func.func @transform_2(%arg0: i32) -> (i32, i32) {
    %c0_i32 = arith.constant 0 : i32
    %c0_i32_0 = arith.constant 0 : i32
    %c0_i32_1 = arith.constant 0 : i32
    return %c0_i32, %c0_i32_0 : i32, i32
  }
  func.func @transform_3(%arg0: i32) -> (i32, i32) {
    %c0_i32 = arith.constant 0 : i32
    %c0_i32_0 = arith.constant 0 : i32
    %c0_i32_1 = arith.constant 0 : i32
    return %c0_i32, %c0_i32_0 : i32, i32
  }
  func.func @transform_4(%arg0: i32) -> (i32, i32) {
    %c0_i32 = arith.constant 0 : i32
    %c0_i32_0 = arith.constant 0 : i32
    %c0_i32_1 = arith.constant 0 : i32
    return %c0_i32, %c0_i32_0 : i32, i32
  }
  func.func @transform_5(%arg0: i32) -> (i32, i32) {
    %c0_i32 = arith.constant 0 : i32
    %c0_i32_0 = arith.constant 0 : i32
    %c0_i32_1 = arith.constant 0 : i32
    return %c0_i32, %c0_i32_0 : i32, i32
  }
  func.func @transform_6(%arg0: i32) -> (i32, i32) {
    %c0_i32 = arith.constant 0 : i32
    %c0_i32_0 = arith.constant 0 : i32
    %c0_i32_1 = arith.constant 0 : i32
    return %c0_i32, %c0_i32_0 : i32, i32
  }
  func.func @transform_7(%arg0: i32) -> (i32, i32) {
    %c0_i32 = arith.constant 0 : i32
    %c0_i32_0 = arith.constant 0 : i32
    %c0_i32_1 = arith.constant 0 : i32
    return %c0_i32, %c0_i32_0 : i32, i32
  }
  func.func @transform_8(%arg0: i32) -> (i32, i32) {
    %c0_i32 = arith.constant 0 : i32
    %c0_i32_0 = arith.constant 0 : i32
    %c0_i32_1 = arith.constant 0 : i32
    return %c0_i32, %c0_i32_0 : i32, i32
  }
  func.func @transform_9(%arg0: i32) -> (i32, i32, i32) {
    %c0_i32 = arith.constant 0 : i32
    %c0_i32_0 = arith.constant 0 : i32
    %c0_i32_1 = arith.constant 0 : i32
    return %arg0, %c0_i32, %c0_i32_0 : i32, i32, i32
  }
}

</mosaic_0001>

<bundles_post_ra>
// kernel: tpu_custom_call.1
= control target key start
LH: loop header
LB: loop body
LE: loop exit
PB: predicated region body
PF: predicated region fallthrough
CT: control target
= control target key end

     0   :  { %14 = vsyncpa [#allocation4], 0  ;;  %s3050_s0 = inlined_call_operand.vmem [shape: f32[2,8,64], index: 0, kind: input, shape index: {}]   ;;  %s3051_s1 = inlined_call_operand.vmem [shape: f32[1,64], index: 1, kind: input, shape index: {}]   ;;  %s3052_s2 = inlined_call_operand.vmem [shape: f32[1,64], index: 2, kind: input, shape index: {}]   ;;  %s3053_s3 = inlined_call_operand.vmem [shape: f32[64,128], index: 3, kind: input, shape index: {}]   ;;  %s3054_s4 = inlined_call_operand.vmem [shape: f32[64,64], index: 4, kind: input, shape index: {}]   ;;  %s3055_s5 = inlined_call_operand.vmem [shape: f32[64,512], index: 5, kind: input, shape index: {}]   ;;  %s3056_s6 = inlined_call_operand.vmem [shape: f32[256,64], index: 6, kind: input, shape index: {}]   ;;  %s3057_s7 = inlined_call_operand.hbm [shape: f32[8,32], index: 7, kind: input, shape index: {}]   ;;  %s3058_s8 = inlined_call_operand.vmem [shape: f32[8,32], index: 8, kind: input, shape index: {}]   ;;  %s3059_s9 = inlined_call_operand.hbm [shape: f32[2,8,64], index: 9, kind: output, shape index: {}]  }
   0x1   :  { %15 = vsyncpa [#allocation5], 0 }
   0x2   :  { %17 = vsyncpa [#allocation5 + $0x1], 0  ;;  %s2519_s30 = smov 0   ;;  %s2521_s10 = smov 0  }
   0x3   :  { %s2523_s11 = smov 0   ;;  %s2525_s12 = smov 0  }
   0x4 LB: > { %s2540_s13 = sadd.s32 4294967295, %s2449_s12   ;;  %s1950_s14 = sadd.s32 4294967294, %s2449_s12   ;;  %s2449_s12 = sphi %s2525_s12, %s3075_s12   ;;  %s2445_s11 = sphi %s2523_s11, %s3074_s11   ;;  %s2441_s10 = sphi %s2521_s10, %s3073_s10   ;;  %s2437_s30 = sphi %s2519_s30, %s3072_s30  }
   0x5   : > { %s2544_s15 = sadd.s32 1, %s2449_s12   ;;  %s224_s16 = sadd.s32 1, %s2445_s11 }
   0x6   : > { %s221_s17 = ssub.s32 %s2449_s12, %s2544_s15  ;;  %p234_p0 = scmp.ne.s32.totalorder %s2445_s11, %s2441_s10 }
   0x7   : > { %p222_p1 = scmp.eq.s32.totalorder %s221_s17, 0  ;;  %p235_p2 = scmp.eq.s32.totalorder %s2540_s13, 1 }
   0x8   : > { %p240_p3 = scmp.ne.s32.totalorder %s2441_s10, %s2437_s30  ;;  %p241_p4 = scmp.eq.s32.totalorder %s1950_s14, 1 }
   0x9   : > { %s2555_s18 = scalar_select %p222_p1, %s2445_s11, %s224_s16  }
   0xa   : > { %p2557_p5 = por %p235_p2, %p234_p0  ;;  %p2561_p6 = por %p241_p4, %p240_p3 }
   0xb   : > { %p1951_p7 = scmp.ge.s32.totalorder %s2449_s12, 1  ;;  %p248_p8 = scmp.lt.s32.totalorder %s2449_s12, 3 }
   0xc   : > { %s3063_s19 = scalar_select %p2557_p5, 1, 0 }
   0xd   : > { %s3064_s20 = scalar_select %p2561_p6, 1, 0 }
   0xe   : > { %p3060_p9 = scmp.eq.s32.totalorder %s2540_s13, 0  ;;  %p2568_p10 = pnand %p1951_p7, %p248_p8 }
   0xf   : > { %s2451_s22 = smov [#allocation3]   ;;  %s2355_s27 = scalar_lea.hbm %s3057_s7, 128 }
  0x10   : > { %s3065_s21 = scalar_select %p2568_p10, 1, 0 }
  0x11   : > { %s279_s23 = sshll.u32 %s2451_s22, 4  ;;  %p2267_p11 = pneg %p2568_p10  ;;  %s280_s23 = int_to_ptr.vmem [resolvable:$true] %s279_s23 }
  0x12   : > { %p2356_p13 = scmp.ne.s32.totalorder %s3057_s7, %s2355_s27  ;;  %p2362_p3 = scmp.lt.u32.totalorder %s2355_s27, %s3057_s7 }
  0x13   : > { %p2576_p12 = pnand %p3060_p9, %p2267_p11 }
  0x15   : > { %p2357_p0 = pneg %p2576_p12 }
  0x17   : > { %p2358_p1 = pnand %p2357_p0, %p2356_p13 }
  0x19   : > { %p2359_p2 = pneg %p2358_p1 }
  0x1b   : > { %p2364_p4 = pnand %p2362_p3, %p2359_p2 }
  0x1d   : > { %2367 = shalt.err (!%p2364_p4)
}
  0x1e   : > { %s2368_s17 = scalar_lea.vmem %s280_s23, 128  ;;  %p2376_p9 = scmp.lt.s32.totalorder %s280_s23, %s280_s23 }
  0x1f   : > { %p2369_p7 = scmp.ne.s32.totalorder %s280_s23, %s2368_s17  ;;  %p2377_p6 = scmp.lt.s32.totalorder %s2368_s17, %s2368_s17 }
  0x21   : > { %p2371_p8 = pnand %p2369_p7, %p2357_p0  ;;  %p2378_p5 = por %p2377_p6, %p2376_p9 }
  0x23   : > { %p2372_p11 = pneg %p2371_p8 }
  0x25   : > { %p2379_p10 = pnand %p2378_p5, %p2372_p11 }
  0x27   : > { %2382 = shalt.err (!%p2379_p10)
}
  0x28   : > { %2270 = dma.hbm_to_vmem [thread:$0]  (!%p2576_p12), %s3057_s7, 128, %s280_s23, [#allocation4]  }
  0x29   : > { %p3067_p13 = scmp.ne.s32.totalorder %s3065_s21, 0 }
  0x2a   : > { %p3068_p1 = scmp.eq.s32.totalorder (!%p3067_p13), %s2540_s13, 0 }
  0x2b   : > { %302 = sbr.rel (%p3067_p13) target bundleno = 4019 (0xfb3), region = 56 }
  0x32   : > { %2428 = dma.done.wait (%p3068_p1), [#allocation4], 128   ;;  %p3069_p0 = pmov %p3068_p1 }
  0x33   : > { %p337_p6 = scmp.lt.s32.totalorder %s2540_s13, 1  ;;  %vm344_vm0 = vcmask 523264   ;;  %v360_v3 = vld [vmem:[%s3053_s3] sm:$0xff]  ;;  %v361_v4 = vld [vmem:[%s3053_s3 + $0x8] sm:$0xff]  ;;  %v2452_v6 = vmov 0.0|0.0   ;;  %v362_v7 = vld [vmem:[%s3053_s3 + $0x10] sm:$0xff] }
  0x34   : > { %2430 = vsyncadd (%p3069_p0), [#allocation4], 4294967168  ;;  %v2166_v5 = vpack.c.bf16 %v361_v4, %v360_v3  ;;  %2165 = vmatprep.subr.bf16.mxu0 %v2452_v6  ;;  %v363_v8 = vld [vmem:[%s3053_s3 + $0x18] sm:$0xff]  ;;  %v364_v10 = vld [vmem:[%s3053_s3 + $0x20] sm:$0xff]  ;;  %vm2453_vm1 = vmmov 0   ;;  %v2454_v12 = vmov 0.0  }
  0x35   : > { %s338_s26 = scalar_select %p337_p6, %s2540_s13, 1  ;;  %v2169_v9 = vpack.c.bf16 %v363_v8, %v362_v7  ;;  %v365_v11 = vld [vmem:[%s3053_s3 + $0x28] sm:$0xff]  ;;  %2083 = vmatprep.mubr.msk.f32.mxu0 %vm2453_vm1, %v2454_v12  ;;  %2096 = vmatprep.subr.mxu1 %v2454_v12  ;;  %v366_v14 = vld [vmem:[%s3053_s3 + $0x30] sm:$0xff]  ;;  %v367_v15 = vld [vmem:[%s3053_s3 + $0x38] sm:$0xff]  ;;  %vm497_vm2 = vcmask 64512   ;;  %vm739_vm3 = vcmask 130048  }
  0x36   : > { %2167 = vmatpush3.bf16.msra.mxu0 %v2166_v5  ;;  %2098 = vmatprep.mubr.msk.f32.mxu1 %vm2453_vm1, %v2454_v12  ;;  %v2172_v13 = vpack.c.bf16 %v365_v11, %v364_v10  ;;  %v2175_v16 = vpack.c.bf16 %v367_v15, %v366_v14  ;;  %v442_v17 = vld [vmem:[%s3058_s8] sm:$0xff]  ;;  %s2455_s25 = smov 80   ;;  %v441_v18 = vld [vmem:[#allocation3] sm:$0xff]  ;;  %s2459_s21 = smov 112   ;;  %vm978_vm4 = vcmask 261248   ;;  %vm1228_vm5 = vcmask 392448  }
  0x37   : > { %s1957_s27 = sshll.u32 %s338_s26, 3  ;;  %2168 = vmatprep.subr.bf16.mxu0 %v2452_v6  ;;  %469 = vrot.lane.b32.xlu1 %v442_v17, %s2455_s25  ;;  %s2456_s26 = smov 64   ;;  %v1958_v23 = vld [vmem:[%s3051_s1] ss:$0 sm:$0xff]  ;;  %vm1467_vm6 = vcmask 523648  }
  0x38   : > { %s340_s29 = scalar_lea.vmem %s3050_s0, %s1957_s27  ;;  %s2457_s27 = smov 32  }
  0x39   : > { %v2607_v0 = vld [vmem:[%s340_s29] sm:$0xff]  ;;  %s2458_s29 = smov 16   ;;  %s2460_s23 = smov 48  }
  0x3a   : > { %v343_v1 = vmul.f32 %v2607_v0, %v2607_v0  ;;  %2170 = vmatpush3.bf16.msra.mxu0 %v2169_v9  ;;  %s2461_s14 = smov 96   ;;  %s2462_s16 = smov 88  }
  0x3b   : > { %2171 = vmatprep.subr.bf16.mxu0 %v2452_v6  ;;  %478 = vrot.lane.b32.xlu1 %v441_v18, %s2455_s25  ;;  %s2463_s17 = smov 120   ;;  %s2464_s22 = smov 40  }
  0x3c   : > { %v345_v2 = vsel %vm344_vm0, %v343_v1, 0.0  ;;  %s2467_s28 = smov 72   ;;  %p3070_p9 = scmp.ne.s32.totalorder %s3063_s19, 0 }
  0x3d   : > { %346 = vadd.xlane.f32.xlu0 %v345_v2 }
  0x3e   : > { %2173 = vmatpush3.bf16.msra.mxu0 %v2172_v13 }
  0x3f   : > { %2174 = vmatprep.subr.bf16.mxu0 %v2452_v6  ;;  %455 = vrot.lane.b32.xlu1 %v441_v18, %s2457_s27 }
  0x42   : > { %2176 = vmatpush3.bf16.msra.mxu0 %v2175_v16 }
  0x43   : > { %2086 = vmatprep.subr.mxu0 %v2454_v12 }
  0x53   : > { %482 = vrot.lane.b32.xlu0 %v442_v17, %s2456_s26 }
  0x57   : > { %445 = vrot.lane.b32.xlu0 %v442_v17, %s2457_s27 }
  0xa9   : > { %v470_v31 = vpop.permute.xlu1 %469 }
  0xad   : > { %v479_v33 = vpop.permute.xlu1 %478 }
  0xb1   : > { %v456_v34 = vpop.permute.xlu1 %455 }
  0xca   : > { %v347_v19 = vpop.xlane.xlu0 %346 }
  0xcb   : > { %v349_v20 = vmul.f32 0.015625, %v347_v19 }
  0xcd   : > { %v350_v21 = vadd.f32 1e-05, %v349_v20 }
  0xce   : > { %v483_v26 = vpop.permute.xlu0 %482 }
  0xcf   : > { %2327 = vrsqrt.f32 %v350_v21 }
  0xd2   : > { %v446_v41 = vpop.permute.xlu0 %445 }
  0xd9   : > { %v2328_v22 = vpop.eup %2327 }
  0xda   : > { %v352_v24 = vmul.f32 %v2328_v22, %v2607_v0 }
  0xdc   : > { %v359_v25 = vmul.f32 %v1958_v23, %v352_v24 }
  0xde   : > { %2084 = vmatmul.mubr.msk.f32.vlgmr.msra.gmra.mrb[0].mxu0 %vm344_vm0, %v359_v25 }
  0xdf   : > { %2088 = vmatprep.mubr.msk.f32.mxu0 %vm2453_vm1, %v2454_v12 }
 0x1b1   : > { %v2661_v27 = vpop.f32.mrb[0].mxu0 }
 0x1b2   : > { %v2085_v28 = vpop.f32.mrb[1].mxu0  ;;  %v485_v29 = vmul.f32 %v483_v26, %v2661_v27  ;;  %v459_v30 = vmul.f32 %v442_v17, %v2661_v27  ;;  %v472_v32 = vmul.f32 %v470_v31, %v2661_v27  ;;  %v481_v35 = vmul.f32 %v479_v33, %v2661_v27 }
 0x1b3   : > { %v458_v38 = vmul.f32 %v456_v34, %v2661_v27  ;;  %v448_v43 = vmul.f32 %v446_v41, %v2661_v27  ;;  %v443_v50 = vmul.f32 %v441_v18, %v2661_v27 }
 0x1b4   : > { %487 = vrot.lane.b32.xlu1 %v485_v29, %s2458_s29 }
 0x1b8   : > { %461 = vrot.lane.b32.xlu1 %v459_v30, %s2457_s27 }
 0x1bc   : > { %465 = vrot.lane.b32.xlu1 %v441_v18, %s2456_s26 }
 0x1c0   : > { %474 = vrot.lane.b32.xlu1 %v472_v32, %s2459_s21 }
 0x226   : > { %v488_v36 = vpop.permute.xlu1 %487 }
 0x227   : > { %v2671_v37 = vadd.f32 %v488_v36, %v481_v35 }
 0x229   : > { %495 = vrot.lane.b32.xlu1 %v2671_v37, %s2460_s23 }
 0x22a   : > { %v462_v39 = vpop.permute.xlu1 %461 }
 0x22b   : > { %v2676_v40 = vadd.f32 %v462_v39, %v458_v38 }
 0x22d   : > { %492 = vrot.lane.b32.xlu0 %v2676_v40, %s2461_s14 }
 0x22e   : > { %v466_v42 = vpop.permute.xlu1 %465 }
 0x22f   : > { %v468_v44 = vmul.f32 %v466_v42, %v2661_v27 }
 0x231   : > { %450 = vrot.lane.b32.xlu0 %v448_v43, %s2461_s14 }
 0x232   : > { %v475_v45 = vpop.permute.xlu1 %474 }
 0x233   : > { %v2681_v46 = vsub.f32 %v468_v44, %v475_v45 }
 0x235   : > { %573 = vrot.lane.b32.xlu1 %v2681_v46, %s2456_s26  ;;  %s2465_s26 = smov 56  }
 0x29b   : > { %v496_v47 = vpop.permute.xlu1 %495 }
 0x29c   : > { %2087 = vmatpush3.xpose.msk.msra.mxu0 %vm497_vm2, %v496_v47 }
 0x29d   : > { %2091 = vmatprep.subr.mxu0 %v2454_v12 }
 0x29f   : > { %v493_v48 = vpop.permute.xlu0 %492 }
 0x2a0   : > { %2089 = vmatmul.mubr.msk.f32.vlgmr.msra.gmra.mrb[2].mxu0 %vm497_vm2, %v493_v48 }
 0x2a1   : > { %2093 = vmatprep.mubr.msk.f32.mxu0 %vm2453_vm1, %v2454_v12 }
 0x2a3   : > { %v451_v49 = vpop.permute.xlu0 %450 }
 0x2a4   : > { %v2692_v52 = vsub.f32 %v443_v50, %v451_v49 }
 0x2a7   : > { %v574_v51 = vpop.permute.xlu1 %573 }
 0x2a8   : > { %2092 = vmatpush3.xpose.msk.msra.mxu0 %vm497_vm2, %v574_v51 }
 0x2a9   : > { %2111 = vmatprep.subr.mxu0 %v2454_v12 }
 0x2ab   : > { %2094 = vmatmul.mubr.msk.f32.vlgmr.msra.gmra.mrb[2].mxu0 %vm497_vm2, %v2692_v52 }
 0x2ac   : > { %2113 = vmatprep.mubr.msk.f32.mxu0 %vm2453_vm1, %v2454_v12 }
 0x37e   : > { %v646_v53 = vpop.f32.mrb[2].mxu0 }
 0x37f   : > { %v650_v54 = vmul.f32 0.25, %v646_v53  ;;  %v2095_v55 = vpop.f32.mrb[3].mxu0 }
 0x381   : > { %v651_v56 = vsel %vm497_vm2, %v650_v54, -inf }
 0x382   : > { %652 = vmax.xlane.f32.xlu1 %v651_v56 }
 0x393   : > { %741 = vrot.lane.b32.xlu1 %v2676_v40, %s2462_s16 }
 0x397   : > { %815 = vrot.lane.b32.xlu1 %v2692_v52, %s2463_s17 }
 0x40f   : > { %v653_v57 = vpop.xlane.xlu1 %652 }
 0x410   : > { %v654_v58 = vsub.f32 %v650_v54, %v653_v57 }
 0x412   : > { %v655_v59 = vmul.f32 1.442695, %v654_v58  ;;  %v1470_v58 = vld [vmem:[%s3054_s4] sm:$0xff] }
 0x413   : > { %v742_v3 = vpop.permute.xlu1 %741 }
 0x414   : > { %2329 = vpow2.f32 %v655_v59  ;;  %v1471_v59 = vld [vmem:[%s3054_s4 + $0x8] sm:$0xff] }
 0x417   : > { %v816_v4 = vpop.permute.xlu1 %815 }
 0x41e   : > { %v2330_v60 = vpop.eup %2329 }
 0x41f   : > { %v657_v61 = vsel %vm497_vm2, %v2330_v60, 0.0 }
 0x420   : > { %658 = vadd.xlane.f32.xlu0 %v657_v61  ;;  %v2178_v61 = vpack.c.bf16 %v1471_v59, %v1470_v58 }
 0x436   : > { %663 = vrot.lane.b32.xlu0 %v2661_v27, %s2457_s27 }
 0x4ad   : > { %v659_v62 = vpop.xlane.xlu0 %658 }
 0x4ae   : > { %2331 = vrcp.f32 %v659_v62  ;;  %v1473_v62 = vld [vmem:[%s3054_s4 + $0x18] sm:$0xff] }
 0x4b1   : > { %v664_v63 = vpop.permute.xlu0 %663 }
 0x4b2   : > { %2097 = vmatpush3.msra.mxu1 %v664_v63  ;;  %2112 = vmatpush3.msra.mxu0 %v664_v63 }
 0x4b3   : > { %2101 = vmatprep.subr.mxu1 %v2454_v12  ;;  %2116 = vmatprep.subr.mxu0 %v2454_v12 }
 0x4b8   : > { %v2332_v1 = vpop.eup %2331 }
 0x4b9   : > { %v661_v2 = vmul.f32 %v2332_v1, %v2330_v60  ;;  %v1472_v60 = vld [vmem:[%s3054_s4 + $0x10] sm:$0xff]  ;;  %v1474_v1 = vld [vmem:[%s3054_s4 + $0x20] sm:$0xff] }
 0x4ba   : > { %v2181_v63 = vpack.c.bf16 %v1473_v62, %v1472_v60  ;;  %v1594_v60 = vld [vmem:[%s3055_s5 + $0xd0] sm:$0xff] }
 0x4bb   : > { %2099 = vmatmul.mubr.msk.f32.vlgmr.msra.gmra.mrb[0].mxu1 %vm497_vm2, %v661_v2  ;;  %v1475_v2 = vld [vmem:[%s3054_s4 + $0x28] sm:$0xff] }
 0x4bc   : > { %2102 = vmatpush3.xpose.msk.msra.mxu1 %vm497_vm2, %v496_v47  ;;  %2103 = vmatprep.mubr.msk.f32.mxu1 %vm2453_vm1, %v2454_v12 }
 0x4bd   : > { %2106 = vmatprep.subr.mxu1 %v2454_v12 }
 0x4bf   : > { %2104 = vmatmul.mubr.msk.f32.vlgmr.msra.gmra.mrb[2].mxu1 %vm497_vm2, %v742_v3  ;;  %v2184_v3 = vpack.c.bf16 %v1475_v2, %v1474_v1 }
 0x4c0   : > { %2107 = vmatpush3.xpose.msk.msra.mxu1 %vm497_vm2, %v574_v51  ;;  %2108 = vmatprep.mubr.msk.f32.mxu1 %vm2453_vm1, %v2454_v12 }
 0x4c1   : > { %2126 = vmatprep.subr.mxu1 %v2454_v12 }
 0x4c7   : > { %2109 = vmatmul.mubr.msk.f32.vlgmr.msra.gmra.mrb[2].mxu1 %vm497_vm2, %v816_v4  ;;  %v1476_v4 = vld [vmem:[%s3054_s4 + $0x30] sm:$0xff] }
 0x4c8   : > { %2128 = vmatprep.mubr.msk.f32.mxu1 %vm2453_vm1, %v2454_v12 }
 0x58e   : > { %v735_v5 = vpop.f32.mrb[0].mxu1 }
 0x58f   : > { %740 = vst.msk [vmem:[#allocation2] sm:$0xff] %vm739_vm3, %v735_v5  ;;  %v2100_v7 = vpop.f32.mrb[1].mxu1  ;;  %v1477_v5 = vld [vmem:[%s3054_s4 + $0x38] sm:$0xff] }
 0x590   : > { %v2187_v7 = vpack.c.bf16 %v1477_v5, %v1476_v4  ;;  %v1981_v4 = vld [vmem:[%s3052_s2] ss:$0 sm:$0xff] }
 0x59a   : > { %v885_v8 = vpop.f32.mrb[2].mxu1 }
 0x59b   : > { %v889_v9 = vmul.f32 0.25, %v885_v8  ;;  %v2110_v10 = vpop.f32.mrb[3].mxu1 }
 0x59d   : > { %v890_v11 = vsel %vm497_vm2, %v889_v9, -inf }
 0x59e   : > { %891 = vmax.xlane.f32.xlu0 %v890_v11 }
 0x5b4   : > { %982 = vrot.lane.b32.xlu0 %v2671_v37, %s2464_s22 }
 0x5b8   : > { %1060 = vrot.lane.b32.xlu0 %v2681_v46, %s2465_s26 }
 0x62b   : > { %v892_v13 = vpop.xlane.xlu0 %891 }
 0x62c   : > { %v893_v14 = vsub.f32 %v889_v9, %v892_v13 }
 0x62e   : > { %v894_v15 = vmul.f32 1.442695, %v893_v14 }
 0x62f   : > { %v983_v20 = vpop.permute.xlu0 %982 }
 0x630   : > { %2333 = vpow2.f32 %v894_v15 }
 0x633   : > { %v1061_v23 = vpop.permute.xlu0 %1060 }
 0x63a   : > { %v2334_v16 = vpop.eup %2333 }
 0x63b   : > { %v896_v17 = vsel %vm497_vm2, %v2334_v16, 0.0 }
 0x63c   : > { %897 = vadd.xlane.f32.xlu1 %v896_v17  ;;  %v1569_v17 = vld [vmem:[%s3055_s5 + $0x8] sm:$0xff] }
 0x64d   : > { %980 = vrot.lane.b32.xlu1 %v2676_v40, %s2455_s25  ;;  %s2466_s25 = smov 104  }
 0x651   : > { %1058 = vrot.lane.b32.xlu1 %v2692_v52, %s2459_s21  ;;  %s334_s21 = sand.u32 1, %s2441_s10  }
 0x652   : > { %s1956_s14 = sshll.u32 %s334_s21, 3 }
 0x653   : > { %s336_s16 = scalar_lea.vmem [#allocation6], %s1956_s14 }
 0x654   : > { %s1879_s17 = sshll.u32 %s336_s16, 4  ;;  %s3009_s17 = int_to_ptr.vmem [resolvable:$true] %s1879_s17 }
 0x6c9   : > { %v898_v18 = vpop.xlane.xlu1 %897 }
 0x6ca   : > { %2335 = vrcp.f32 %v898_v18  ;;  %v1573_v18 = vld [vmem:[%s3055_s5 + $0x28] sm:$0xff] }
 0x6cd   : > { %v981_v22 = vpop.permute.xlu1 %980 }
 0x6d1   : > { %v1059_v24 = vpop.permute.xlu1 %1058 }
 0x6d4   : > { %v2336_v19 = vpop.eup %2335 }
 0x6d5   : > { %v900_v21 = vmul.f32 %v2336_v19, %v2334_v16  ;;  %v1575_v19 = vld [vmem:[%s3055_s5 + $0x38] sm:$0xff] }
 0x6d7   : > { %2114 = vmatmul.mubr.msk.f32.vlgmr.msra.gmra.mrb[4].mxu0 %vm497_vm2, %v900_v21  ;;  %v1572_v21 = vld [vmem:[%s3055_s5 + $0x20] sm:$0xff] }
 0x6d8   : > { %2117 = vmatpush3.xpose.msk.msra.mxu0 %vm497_vm2, %v983_v20  ;;  %2118 = vmatprep.mubr.msk.f32.mxu0 %vm2453_vm1, %v2454_v12 }
 0x6d9   : > { %2121 = vmatprep.subr.mxu0 %v2454_v12 }
 0x6db   : > { %2119 = vmatmul.mubr.msk.f32.vlgmr.msra.gmra.mrb[6].mxu0 %vm497_vm2, %v981_v22 }
 0x6dc   : > { %2122 = vmatpush3.xpose.msk.msra.mxu0 %vm497_vm2, %v1061_v23  ;;  %2123 = vmatprep.mubr.msk.f32.mxu0 %vm2453_vm1, %v2454_v12 }
 0x6dd   : > { %2141 = vmatprep.subr.mxu0 %v2454_v12 }
 0x6e3   : > { %2124 = vmatmul.mubr.msk.f32.vlgmr.msra.gmra.mrb[6].mxu0 %vm497_vm2, %v1059_v24  ;;  %v1570_v24 = vld [vmem:[%s3055_s5 + $0x10] sm:$0xff] }
 0x6e4   : > { %2143 = vmatprep.mubr.msk.f32.mxu0 %vm2453_vm1, %v2454_v12 }
 0x7aa   : > { %v970_v25 = vpop.f32.mrb[4].mxu0 }
 0x7ab   : > { %v2115_v26 = vpop.f32.mrb[5].mxu0 }
 0x7b6   : > { %v1132_v28 = vpop.f32.mrb[6].mxu0 }
 0x7b7   : > { %v1136_v29 = vmul.f32 0.25, %v1132_v28  ;;  %v2125_v30 = vpop.f32.mrb[7].mxu0  ;;  %v1577_v28 = vld [vmem:[%s3055_s5 + $0x48] sm:$0xff] }
 0x7b8   : > { %v1579_v30 = vld [vmem:[%s3055_s5 + $0x58] sm:$0xff] }
 0x7b9   : > { %v1137_v31 = vsel %vm497_vm2, %v1136_v29, -inf }
 0x7ba   : > { %1138 = vmax.xlane.f32.xlu0 %v1137_v31 }
 0x7d0   : > { %1148 = vrot.lane.b32.xlu0 %v2661_v27, %s2458_s29 }
 0x7d4   : > { %1304 = vrot.lane.b32.xlu0 %v2692_v52, %s2466_s25 }
 0x847   : > { %v1139_v32 = vpop.xlane.xlu0 %1138 }
 0x848   : > { %v1140_v33 = vsub.f32 %v1136_v29, %v1139_v32  ;;  %v1581_v29 = vld [vmem:[%s3055_s5 + $0x68] sm:$0xff]  ;;  %v1583_v32 = vld [vmem:[%s3055_s5 + $0x78] sm:$0xff] }
 0x849   : > { %v2193_v31 = vpack.c.bf16 %v1581_v29, %v1577_v28  ;;  %v1767_v29 = vld [vmem:[%s3056_s6 + $0x30] sm:$0xff] }
 0x84a   : > { %v1141_v34 = vmul.f32 1.442695, %v1140_v33  ;;  %v1576_v33 = vld [vmem:[%s3055_s5 + $0x40] sm:$0xff] }
 0x84b   : > { %v1149_v35 = vpop.permute.xlu0 %1148 }
 0x84c   : > { %2337 = vpow2.f32 %v1141_v34  ;;  %2127 = vmatpush3.msra.mxu1 %v1149_v35  ;;  %2142 = vmatpush3.msra.mxu0 %v1149_v35  ;;  %v1580_v34 = vld [vmem:[%s3055_s5 + $0x60] sm:$0xff]  ;;  %v2209_v35 = vpack.c.bf16 %v1583_v32, %v1579_v30  ;;  %v1768_v30 = vld [vmem:[%s3056_s6 + $0x38] sm:$0xff] }
 0x84d   : > { %2131 = vmatprep.subr.mxu1 %v2454_v12  ;;  %2177 = vmatprep.subr.bf16.mxu0 %v2452_v6  ;;  %v1785_v32 = vld [vmem:[%s3056_s6 + $0xc0] sm:$0xff] }
 0x856   : > { %v2338_v36 = vpop.eup %2337 }
 0x857   : > { %v1143_v37 = vsel %vm497_vm2, %v2338_v36, 0.0 }
 0x858   : > { %1144 = vadd.xlane.f32.xlu1 %v1143_v37  ;;  %v1578_v37 = vld [vmem:[%s3055_s5 + $0x50] sm:$0xff] }
 0x869   : > { %1230 = vrot.lane.b32.xlu1 %v2676_v40, %s2467_s28  ;;  %v1305_v40 = vpop.permute.xlu0 %1304  ;;  %s1866_s28 = scalar_lea.sflag [#allocation5], %s334_s21 }
 0x8e5   : > { %v1145_v27 = vpop.xlane.xlu1 %1144 }
 0x8e6   : > { %2339 = vrcp.f32 %v1145_v27  ;;  %v1582_v27 = vld [vmem:[%s3055_s5 + $0x70] sm:$0xff] }
 0x8e9   : > { %v1231_v41 = vpop.permute.xlu1 %1230 }
 0x8f0   : > { %v2340_v38 = vpop.eup %2339 }
 0x8f1   : > { %v1147_v39 = vmul.f32 %v2340_v38, %v2338_v36  ;;  %v2195_v36 = vpack.c.bf16 %v1580_v34, %v1576_v33  ;;  %v2211_v38 = vpack.c.bf16 %v1582_v27, %v1578_v37  ;;  %v1786_v33 = vld [vmem:[%s3056_s6 + $0xc8] sm:$0xff]  ;;  %v1787_v27 = vld [vmem:[%s3056_s6 + $0xd0] sm:$0xff] }
 0x8f2   : > { %v2237_v34 = vpack.c.bf16 %v1786_v33, %v1785_v32 }
 0x8f3   : > { %2129 = vmatmul.mubr.msk.f32.vlgmr.msra.gmra.mrb[4].mxu1 %vm497_vm2, %v1147_v39  ;;  %v1585_v39 = vld [vmem:[%s3055_s5 + $0x88] sm:$0xff] }
 0x8f4   : > { %2132 = vmatpush3.xpose.msk.msra.mxu1 %vm497_vm2, %v983_v20  ;;  %2133 = vmatprep.mubr.msk.f32.mxu1 %vm2453_vm1, %v2454_v12  ;;  %v1568_v20 = vld [vmem:[%s3055_s5] sm:$0xff] }
 0x8f5   : > { %2136 = vmatprep.subr.mxu1 %v2454_v12 }
 0x8f7   : > { %2134 = vmatmul.mubr.msk.f32.vlgmr.msra.gmra.mrb[6].mxu1 %vm497_vm2, %v1231_v41  ;;  %v1589_v41 = vld [vmem:[%s3055_s5 + $0xa8] sm:$0xff] }
 0x8f8   : > { %2137 = vmatpush3.xpose.msk.msra.mxu1 %vm497_vm2, %v1061_v23  ;;  %2138 = vmatprep.mubr.msk.f32.mxu1 %vm2453_vm1, %v2454_v12  ;;  %v2191_v23 = vpack.c.bf16 %v1572_v21, %v1568_v20  ;;  %v1782_v20 = vld [vmem:[%s3056_s6 + $0xa8] sm:$0xff] }
 0x8ff   : > { %2139 = vmatmul.mubr.msk.f32.vlgmr.msra.gmra.mrb[6].mxu1 %vm497_vm2, %v1305_v40  ;;  %v1587_v40 = vld [vmem:[%s3055_s5 + $0x98] sm:$0xff] }
 0x900   : > { %1667 = vmatprep.mubr.f32.mxu1 %v2454_v12 }
 0x9c6   : > { %v1220_v42 = vpop.f32.mrb[4].mxu1 }
 0x9c7   : > { %v2130_v43 = vpop.f32.mrb[5].mxu1 }
 0x9c8   : > { %v1591_v43 = vld [vmem:[%s3055_s5 + $0xb8] sm:$0xff] }
 0x9d2   : > { %v1374_v44 = vpop.f32.mrb[6].mxu1 }
 0x9d3   : > { %v1378_v45 = vmul.f32 0.25, %v1374_v44  ;;  %v2140_v46 = vpop.f32.mrb[7].mxu1  ;;  %v1584_v44 = vld [vmem:[%s3055_s5 + $0x80] sm:$0xff] }
 0x9d4   : > { %v2213_v46 = vpack.c.bf16 %v1591_v43, %v1587_v40  ;;  %v1772_v40 = vld [vmem:[%s3056_s6 + $0x58] sm:$0xff]  ;;  %v1789_v43 = vld [vmem:[%s3056_s6 + $0xe0] sm:$0xff] }
 0x9d5   : > { %v1379_v47 = vsel %vm497_vm2, %v1378_v45, -inf }
 0x9d6   : > { %1380 = vmax.xlane.f32.xlu1 %v1379_v47 }
 0x9e7   : > { %1225 = vrot.lane.b32.xlu1 %v1220_v42, %s2457_s27  ;;  %v2197_v42 = vpack.c.bf16 %v1589_v41, %v1585_v39  ;;  %v1771_v41 = vld [vmem:[%s3056_s6 + $0x50] sm:$0xff]  ;;  %s2383_s27 = scalar_lea.vmem %s3009_s17, 128 }
 0x9e8   : > { %p2384_p5 = scmp.ne.s32.totalorder %s3009_s17, %s2383_s27 }
 0x9ea   : > { %p2385_p10 = pnand %p2384_p5, %p3070_p9 }
 0x9ec   : > { %p2386_p12 = pneg %p2385_p10 }
 0xa63   : > { %v1381_v48 = vpop.xlane.xlu1 %1380 }
 0xa64   : > { %v1382_v49 = vsub.f32 %v1378_v45, %v1381_v48  ;;  %v1588_v45 = vld [vmem:[%s3055_s5 + $0xa0] sm:$0xff]  ;;  %v1586_v48 = vld [vmem:[%s3055_s5 + $0x90] sm:$0xff] }
 0xa65   : > { %v2199_v47 = vpack.c.bf16 %v1588_v45, %v1584_v44  ;;  %v1790_v44 = vld [vmem:[%s3056_s6 + $0xe8] sm:$0xff] }
 0xa66   : > { %v1383_v50 = vmul.f32 1.442695, %v1382_v49  ;;  %v1590_v49 = vld [vmem:[%s3055_s5 + $0xb0] sm:$0xff]  ;;  %v2245_v45 = vpack.c.bf16 %v1790_v44, %v1789_v43 }
 0xa67   : > { %v1226_v55 = vpop.permute.xlu1 %1225 }
 0xa68   : > { %2341 = vpow2.f32 %v1383_v50  ;;  %v2215_v50 = vpack.c.bf16 %v1590_v49, %v1586_v48  ;;  %v1791_v49 = vld [vmem:[%s3056_s6 + $0xf0] sm:$0xff] }
 0xa72   : > { %v2342_v51 = vpop.eup %2341 }
 0xa73   : > { %v1385_v52 = vsel %vm497_vm2, %v2342_v51, 0.0 }
 0xa74   : > { %1386 = vadd.xlane.f32.xlu0 %v1385_v52  ;;  %v1597_v52 = vld [vmem:[%s3055_s5 + $0xe8] sm:$0xff] }
 0xa8a   : > { %975 = vrot.lane.b32.xlu0 %v970_v25, %s2458_s29  ;;  %v1574_v25 = vld [vmem:[%s3055_s5 + $0x30] sm:$0xff] }
 0xa8b   : > { %v2207_v26 = vpack.c.bf16 %v1574_v25, %v1570_v24  ;;  %v1783_v25 = vld [vmem:[%s3056_s6 + $0xb0] sm:$0xff] }
 0xb01   : > { %v1387_v53 = vpop.xlane.xlu0 %1386 }
 0xb02   : > { %2343 = vrcp.f32 %v1387_v53  ;;  %v1595_v53 = vld [vmem:[%s3055_s5 + $0xd8] sm:$0xff] }
 0xb05   : > { %v976_v54 = vpop.permute.xlu0 %975 }
 0xb06   : > { %979 = vst.msk [vmem:[#allocation2] sm:$0xff] %vm978_vm4, %v976_v54 }
 0xb07   : > { %1229 = vst.msk [vmem:[#allocation2] sm:$0xff] %vm1228_vm5, %v1226_v55  ;;  %v1599_v55 = vld [vmem:[%s3055_s5 + $0xf8] sm:$0xff] }
 0xb08   : > { %v2217_v58 = vpack.c.bf16 %v1599_v55, %v1595_v53  ;;  %v1776_v53 = vld [vmem:[%s3056_s6 + $0x78] sm:$0xff] }
 0xb0c   : > { %v2344_v56 = vpop.eup %2343 }
 0xb0d   : > { %v1389_v57 = vmul.f32 %v2344_v56, %v2342_v51  ;;  %v1593_v51 = vld [vmem:[%s3055_s5 + $0xc8] sm:$0xff]  ;;  %v1592_v56 = vld [vmem:[%s3055_s5 + $0xc0] sm:$0xff] }
 0xb0e   : > { %v2201_v54 = vpack.c.bf16 %v1597_v52, %v1593_v51  ;;  %v1775_v52 = vld [vmem:[%s3056_s6 + $0x70] sm:$0xff] }
 0xb0f   : > { %2144 = vmatmul.mubr.msk.f32.vlgmr.msra.gmra.mrb[8].mxu0 %vm497_vm2, %v1389_v57  ;;  %v1596_v57 = vld [vmem:[%s3055_s5 + $0xe0] sm:$0xff] }
 0xb10   : > { %2162 = vmatprep.mubr.msk.f32.mxu0 %vm2453_vm1, %v2454_v12  ;;  %2179 = vmatpush3.bf16.msra.mxu0 %v2178_v61  ;;  %v2203_v59 = vpack.c.bf16 %v1596_v57, %v1592_v56  ;;  %v1598_v61 = vld [vmem:[%s3055_s5 + $0xf0] sm:$0xff] }
 0xb11   : > { %2180 = vmatprep.subr.bf16.mxu0 %v2452_v6  ;;  %v2219_v62 = vpack.c.bf16 %v1598_v61, %v1594_v60 }
 0xb14   : > { %2182 = vmatpush3.bf16.msra.mxu0 %v2181_v63 }
 0xb15   : > { %2183 = vmatprep.subr.bf16.mxu0 %v2452_v6 }
 0xb18   : > { %2185 = vmatpush3.bf16.msra.mxu0 %v2184_v3 }
 0xb19   : > { %2186 = vmatprep.subr.bf16.mxu0 %v2452_v6 }
 0xb1c   : > { %2188 = vmatpush3.bf16.msra.mxu0 %v2187_v7 }
 0xbe2   : > { %v1459_v8 = vpop.f32.mrb[8].mxu0 }
 0xbe3   : > { %1464 = vrot.lane.b32.xlu1 %v1459_v8, %s2460_s23  ;;  %v2145_v9 = vpop.f32.mrb[9].mxu0  ;;  %v1777_v8 = vld [vmem:[%s3056_s6 + $0x80] sm:$0xff]  ;;  %s1987_s23 = sshll.u32 %s2540_s13, 7  ;;  %s2468_s13 = smov [#allocation6]  }
 0xbe4   : > { %v1778_v9 = vld [vmem:[%s3056_s6 + $0x88] sm:$0xff]  ;;  %s3007_s25 = scalar_lea.hbm %s3059_s9, %s1987_s23  ;;  %s2387_s24 = sshll.u32 %s2468_s13, 4  ;;  %s2388_s24 = int_to_ptr.vmem [resolvable:$false] %s2387_s24 }
 0xbe5   : > { %s2389_s29 = scalar_lea.vmem %s2388_s24, 256  ;;  %p2390_p2 = scmp.lt.s32.totalorder %s3009_s17, %s2388_s24 }
 0xbe6   : > { %p2391_p3 = scmp.lt.s32.totalorder %s2389_s29, %s2383_s27 }
 0xbe8   : > { %p2392_p4 = por %p2391_p3, %p2390_p2 }
 0xbea   : > { %p2393_p7 = pnand %p2392_p4, %p2386_p12 }
 0xc55   : > { %v1465_v10 = vpop.permute.xlu1 %1464 }
 0xc56   : > { %1468 = vst.msk [vmem:[#allocation2] sm:$0xff] %vm1467_vm6, %v1465_v10  ;;  %v2221_v10 = vpack.c.bf16 %v1778_v9, %v1777_v8 }
 0xc5d   : > { %v1469_v11 = vld [vmem:[#allocation2] sm:$0xff] }
 0xc5e   : > { %2163 = vmatmul.mubr.msk.f32.vlgmr.msra.gmra.mrb[10].mxu0 %vm344_vm0, %v1469_v11  ;;  %v1761_v11 = vld [vmem:[%s3056_s6] sm:$0xff] }
 0xc5f   : > { %1738 = vmatprep.mubr.f32.mxu0 %v2454_v12  ;;  %v2189_v12 = vpack.c.bf16 %v1573_v18, %v1569_v17  ;;  %v1763_v18 = vld [vmem:[%s3056_s6 + $0x10] sm:$0xff] }
 0xc61   : > { %2190 = vmatprep.subr.bf16.mxu1 %v2189_v12 }
 0xc62   : > { %2192 = vmatpush1.bf16.msra.mxu1 %v2191_v23  ;;  %v1766_v23 = vld [vmem:[%s3056_s6 + $0x28] sm:$0xff] }
 0xc63   : > { %2194 = vmatprep.subr.bf16.mxu1 %v2193_v31  ;;  %v2235_v31 = vpack.c.bf16 %v1768_v30, %v1767_v29 }
 0xc66   : > { %2196 = vmatpush1.bf16.msra.mxu1 %v2195_v36  ;;  %v1770_v36 = vld [vmem:[%s3056_s6 + $0x48] sm:$0xff] }
 0xc67   : > { %2198 = vmatprep.subr.bf16.mxu1 %v2197_v42  ;;  %v2243_v42 = vpack.c.bf16 %v1772_v40, %v1771_v41 }
 0xc6a   : > { %2200 = vmatpush1.bf16.msra.mxu1 %v2199_v47  ;;  %v1774_v47 = vld [vmem:[%s3056_s6 + $0x68] sm:$0xff] }
 0xc6b   : > { %2202 = vmatprep.subr.bf16.mxu1 %v2201_v54  ;;  %v2251_v54 = vpack.c.bf16 %v1776_v53, %v1775_v52 }
 0xc6e   : > { %2204 = vmatpush1.bf16.msra.mxu1 %v2203_v59 }
 0xc6f   : > { %2222 = vmatprep.subr.bf16.mxu1 %v2221_v10 }
 0xd31   : > { %v1547_v13 = vpop.f32.mrb[10].mxu0 }
 0xd32   : > { %v2798_v14 = vadd.f32 %v1547_v13, %v2607_v0  ;;  %v2164_v15 = vpop.f32.mrb[11].mxu0  ;;  %v1571_v0 = vld [vmem:[%s3055_s5 + $0x18] sm:$0xff]  ;;  %v1762_v13 = vld [vmem:[%s3056_s6 + $0x8] sm:$0xff] }
 0xd33   : > { %v2205_v22 = vpack.c.bf16 %v1575_v19, %v1571_v0  ;;  %v2223_v15 = vpack.c.bf16 %v1762_v13, %v1761_v11  ;;  %v1764_v0 = vld [vmem:[%s3056_s6 + $0x18] sm:$0xff]  ;;  %v1781_v19 = vld [vmem:[%s3056_s6 + $0xa0] sm:$0xff] }
 0xd34   : > { %v1553_v6 = vmul.f32 %v2798_v14, %v2798_v14  ;;  %v2227_v12 = vpack.c.bf16 %v1764_v0, %v1763_v18  ;;  %v2229_v21 = vpack.c.bf16 %v1782_v20, %v1781_v19 }
 0xd35   : > { %2206 = vmatprep.subr.bf16.mxu0 %v2205_v22  ;;  %v1765_v22 = vld [vmem:[%s3056_s6 + $0x20] sm:$0xff] }
 0xd36   : > { %v1554_v16 = vsel %vm344_vm0, %v1553_v6, 0.0  ;;  %2208 = vmatpush1.bf16.msra.mxu0 %v2207_v26  ;;  %v1779_v6 = vld [vmem:[%s3056_s6 + $0x90] sm:$0xff]  ;;  %v2231_v24 = vpack.c.bf16 %v1766_v23, %v1765_v22  ;;  %v1784_v26 = vld [vmem:[%s3056_s6 + $0xb8] sm:$0xff] }
 0xd37   : > { %1555 = vadd.xlane.f32.xlu0 %v1554_v16  ;;  %2210 = vmatprep.subr.bf16.mxu0 %v2209_v35  ;;  %v1780_v16 = vld [vmem:[%s3056_s6 + $0x98] sm:$0xff]  ;;  %v2233_v28 = vpack.c.bf16 %v1784_v26, %v1783_v25  ;;  %v1769_v35 = vld [vmem:[%s3056_s6 + $0x40] sm:$0xff] }
 0xd38   : > { %v2225_v17 = vpack.c.bf16 %v1780_v16, %v1779_v6  ;;  %v2239_v37 = vpack.c.bf16 %v1770_v36, %v1769_v35 }
 0xd3a   : > { %2212 = vmatpush1.bf16.msra.mxu0 %v2211_v38  ;;  %v1788_v38 = vld [vmem:[%s3056_s6 + $0xd8] sm:$0xff] }
 0xd3b   : > { %2214 = vmatprep.subr.bf16.mxu0 %v2213_v46  ;;  %v2241_v39 = vpack.c.bf16 %v1788_v38, %v1787_v27  ;;  %v1773_v46 = vld [vmem:[%s3056_s6 + $0x60] sm:$0xff] }
 0xd3c   : > { %v2247_v48 = vpack.c.bf16 %v1774_v47, %v1773_v46 }
 0xd3e   : > { %2216 = vmatpush1.bf16.msra.mxu0 %v2215_v50  ;;  %v1792_v50 = vld [vmem:[%s3056_s6 + $0xf8] sm:$0xff] }
 0xd3f   : > { %2218 = vmatprep.subr.bf16.mxu0 %v2217_v58  ;;  %v2249_v51 = vpack.c.bf16 %v1792_v50, %v1791_v49 }
 0xd42   : > { %2220 = vmatpush1.bf16.msra.mxu0 %v2219_v62 }
 0xdc4   : > { %v1556_v63 = vpop.xlane.xlu0 %1555 }
 0xdc5   : > { %v1557_v1 = vmul.f32 0.015625, %v1556_v63 }
 0xdc7   : > { %v1558_v2 = vadd.f32 1e-05, %v1557_v1 }
 0xdc9   : > { %2345 = vrsqrt.f32 %v1558_v2 }
 0xdd3   : > { %v2346_v3 = vpop.eup %2345 }
 0xdd4   : > { %v1560_v5 = vmul.f32 %v2346_v3, %v2798_v14 }
 0xdd6   : > { %v1567_v7 = vmul.f32 %v1981_v4, %v1560_v5 }
 0xdd8   : > { %1982 = vmatmul.mubr.msk.f32.vlgmr.msra.gmra.mrb[8].mxu1 %vm344_vm0, %v1567_v7  ;;  %1983 = vmatmul.mubr.msk.f32.vlgmr.msra.gmra.mrb[12].mxu0 %vm344_vm0, %v1567_v7 }
 0xdd9   : > { %2224 = vmatpush3.bf16.msra.mxu1 %v2223_v15 }
 0xdda   : > { %2226 = vmatprep.subr.bf16.mxu1 %v2225_v17 }
 0xddd   : > { %2228 = vmatpush3.bf16.msra.mxu1 %v2227_v12 }
 0xdde   : > { %2230 = vmatprep.subr.bf16.mxu1 %v2229_v21 }
 0xde1   : > { %2232 = vmatpush3.bf16.msra.mxu1 %v2231_v24 }
 0xde2   : > { %2234 = vmatprep.subr.bf16.mxu1 %v2233_v28 }
 0xde5   : > { %2236 = vmatpush3.bf16.msra.mxu1 %v2235_v31 }
 0xde6   : > { %2238 = vmatprep.subr.bf16.mxu1 %v2237_v34 }
 0xde9   : > { %2240 = vmatpush3.bf16.msra.mxu1 %v2239_v37 }
 0xdea   : > { %2242 = vmatprep.subr.bf16.mxu1 %v2241_v39 }
 0xded   : > { %2244 = vmatpush3.bf16.msra.mxu1 %v2243_v42 }
 0xdee   : > { %2246 = vmatprep.subr.bf16.mxu1 %v2245_v45 }
 0xdf1   : > { %2248 = vmatpush3.bf16.msra.mxu1 %v2247_v48 }
 0xdf2   : > { %2250 = vmatprep.subr.bf16.mxu1 %v2249_v51 }
 0xdf5   : > { %2252 = vmatpush3.bf16.msra.mxu1 %v2251_v54 }
 0xeab   : > { %v1669_v55 = vpop.f32.mrb[8].mxu1  ;;  %v1740_v56 = vpop.f32.mrb[12].mxu0 }
 0xeac   : > { %v1984_v57 = vmul.f32 -1.442695, %v1669_v55  ;;  %v1671_v58 = vpop.f32.mrb[9].mxu1  ;;  %v1742_v59 = vpop.f32.mrb[13].mxu0 }
 0xead   : > { %v1985_v60 = vmul.f32 -1.442695, %v1671_v58 }
 0xeae   : > { %2347 = vpow2.f32 %v1984_v57 }
 0xeaf   : > { %2349 = vpow2.f32 %v1985_v60 }
 0xeb8   : > { %v2348_v61 = vpop.eup %2347 }
 0xeb9   : > { %v2350_v62 = vpop.eup %2349  ;;  %v1751_v63 = vadd.f32 1.0, %v2348_v61 }
 0xeba   : > { %v1752_v1 = vadd.f32 1.0, %v2350_v62 }
 0xebb   : > { %2351 = vrcp.f32 %v1751_v63 }
 0xebc   : > { %2353 = vrcp.f32 %v1752_v1 }
 0xec5   : > { %v2352_v2 = vpop.eup %2351 }
 0xec6   : > { %v2354_v3 = vpop.eup %2353  ;;  %v1757_v4 = vmul.f32 %v2352_v2, %v1669_v55 }
 0xec7   : > { %v1758_v5 = vmul.f32 %v2354_v3, %v1671_v58 }
 0xec8   : > { %v1759_v7 = vmul.f32 %v1757_v4, %v1740_v56 }
 0xec9   : > { %v1760_v8 = vmul.f32 %v1758_v5, %v1742_v59 }
 0xecb   : > { %1857 = vmatprep.mubr.f32.mxu1 %v1760_v8 }
 0xecc   : > { %1858 = vmatmul.mubr.f32.vlgmr.msra.gmra.mrb[10].mxu1 %v1759_v7 }
 0xf9f   : > { %v2064_v9 = vpop.f32.mrb[10].mxu1 }
 0xfa0   : > { %v2065_v10 = vpop.f32.mrb[11].mxu1 }
 0xfa1   : > { %v2066_v11 = vadd.f32 %v2065_v10, %v2064_v9 }
 0xfa3   : > { %v1863_v13 = vadd.f32 %v2066_v11, %v2798_v14 }
 0xfa5   : > { %1864 = vst.msk [vmem:[%s336_s16] sm:$0xff] %vm344_vm0, %v1863_v13 }
 0xfa6   : > { %2396 = shalt.err (!%p2393_p7)
}
 0xfa7   : > { %s2397_s21 = scalar_lea.hbm %s3007_s25, 128  ;;  %s2401_s16 = scalar_lea.hbm %s3059_s9, 256 }
 0xfa8   : > { %p2398_p8 = scmp.ne.s32.totalorder %s3007_s25, %s2397_s21  ;;  %p2402_p1 = scmp.lt.u32.totalorder %s3007_s25, %s3059_s9 }
 0xfa9   : > { %p2403_p0 = scmp.lt.u32.totalorder %s2401_s16, %s2397_s21  ;;  %p2405_p5 = scmp.lt.u32.totalorder %s2397_s21, %s3007_s25 }
 0xfaa   : > { %p2399_p11 = pnand %p2398_p8, %p3070_p9 }
 0xfab   : > { %p2404_p6 = por %p2403_p0, %p2402_p1 }
 0xfac   : > { %p2400_p13 = pneg %p2399_p11 }
 0xfad   : > { %p2406_p10 = por %p2405_p5, %p2404_p6 }
 0xfaf   : > { %p2407_p12 = pnand %p2406_p10, %p2400_p13 }
 0xfb1   : > { %2410 = shalt.err (!%p2407_p12)
}
 0xfb2   : > { %2265 = dma.vmem_to_hbm [thread:$0]  (%p3070_p9), %s3009_s17, 128, %s3007_s25, %s1866_s28  }
 0xfb3 PF: > { %p2277_p2 = scmp.ge.s32.totalorder %s2449_s12, 2  ;;  %s1891_s27 = sand.u32 1, %s2437_s30  }
 0xfb4   : > { %p3071_p3 = scmp.ne.s32.totalorder %s3064_s20, 0  ;;  %s1892_s13 = scalar_lea.sflag [#allocation5], %s1891_s27 }
 0xfb6   : > { %p2272_p4 = pnand %p2277_p2, %p3071_p3 }
 0xfb8   : > { %2432 = dma.done.wait (!%p2272_p4), %s1892_s13, 128  }
 0xfb9   : > { %2434 = vsyncadd (!%p2272_p4), %s1892_s13, 4294967168  ;;  %p20_p7 = scmp.ge.s32.totalorder %s2544_s15, 4   ;;  %s3072_s30 = smov %s2441_s10 }
 0xfba   : > { %s3073_s10 = smov %s2445_s11  ;;  %s3074_s11 = smov %s2555_s18 }
 0xfbb   : > { %s3075_s12 = smov %s2544_s15  ;;  %22 = sbr.rel (!%p20_p7) target bundleno = 4 (0x4), region = 96 }
 0xfc2   :  { %1897 = vsyncpa [#allocation4], 1 }
 0xfc3   :  { %1899 = vsyncpa [#allocation4 + $0x1], 1 }
 0xfc4   :  { %1900 = vsyncpa [#allocation5], 1 }
 0xfc5   :  { %1902 = vsyncpa [#allocation5 + $0x1], 1 }

</bundles_post_ra>
